<compile_context>
chip_gen: v6e
topology: v6e:2x2x1
jax: 0.10.0
libtpu: 0.0.40
codegen_flags: <defaults>
</compile_context>

<pallas_src>
import jax
import jax.numpy as jnp
from jax.experimental import pallas as pl
from jax.experimental.pallas import tpu as pltpu

# ----------------------- config (mirrors Model.__init__ args) ----------------
EQUI_DIMS = 256          # args.equi_dims
INV_PART  = False        # args.inv_part
DEEP_END  = False        # args.deep_end
OUT_DIM   = 3            # args.experience != 'quat'
FEAT_DIM  = 512          # resnet feature width
IN_DIMS   = EQUI_DIMS if not INV_PART else FEAT_DIM - EQUI_DIMS

CONV_C    = 16           # stand-in backbone conv width (Cout)
CONV_CIN  = 3            # image channels
H_IMG     = 16           # stand-in input spatial size
W_IMG     = 16
OUT_PAD   = 128          # lane-dense padded head-output width (sliced to OUT_DIM)

K_CONV = 3 * (W_IMG + 2) * CONV_CIN      # 162: fused 3x(dh row-window) contraction
K_PAD  = 256                             # zero-padded, lane-aligned K
N_CONV = W_IMG * CONV_C                  # 256: conv output lanes (w, c) flattened


# ------------------------------ backbone kernel -------------------------------
def _backbone_kernel(lhs_ref, wconv_ref, brow_ref, pool_ref, fcw_ref, fcb_ref,
                     feat_ref):
    """One grid step = TB images.  conv3x3(SAME)+ReLU -> GAP -> FC, all matmuls."""
    # Fused banded conv: (TB*H, 256) @ (256, 256) -> lane-dense (w, c) output.
    acc = jnp.dot(lhs_ref[...], wconv_ref[...], preferred_element_type=jnp.float32)
    h = jnp.maximum(acc + brow_ref[...], 0.0)                 # (TB*H, W*Cout)
    # Per-image H-mean via block-diagonal 1/H pooling matmul (no reshapes).
    pooled = jnp.dot(pool_ref[...], h, preferred_element_type=jnp.float32)  # (TB, 256)
    # W-mean + channel GAP->FC folded into one matmul (fc_w pre-tiled over W, /W).
    feat_ref[...] = (jnp.dot(pooled, fcw_ref[...],
                             preferred_element_type=jnp.float32)
                     + fcb_ref[...])                          # (TB, FEAT_DIM)


# -------------------------------- head kernel ---------------------------------
def _head_kernel(feat_ref, *rest):
    """Model's own compute: slice equi part, concat-free linear head."""
    if DEEP_END:
        w0_ref, b0_ref, w1_ref, b1_ref, w2_ref, b2_ref, o_ref = rest
    else:
        w0_ref, b0_ref, o_ref = rest

    f = feat_ref[...]                                        # (2B, FEAT_DIM)
    bb = f.shape[0] // 2                                     # images per branch
    if not INV_PART:
        ox = f[0:bb, FEAT_DIM - EQUI_DIMS:]
        oy = f[bb:2 * bb, FEAT_DIM - EQUI_DIMS:]
    else:
        ox = f[0:bb, :FEAT_DIM - EQUI_DIMS]
        oy = f[bb:2 * bb, :FEAT_DIM - EQUI_DIMS]
    # concat-free: cat([ox, oy], 1) @ w0 == ox @ w0[:IN] + oy @ w0[IN:]
    z = (jnp.dot(ox, w0_ref[0:IN_DIMS, :], preferred_element_type=jnp.float32)
         + jnp.dot(oy, w0_ref[IN_DIMS:, :], preferred_element_type=jnp.float32)
         + b0_ref[...])
    if DEEP_END:
        z = jnp.maximum(z, 0.0)
        z = jnp.maximum(
            jnp.dot(z, w1_ref[...], preferred_element_type=jnp.float32)
            + b1_ref[...], 0.0)
        z = (jnp.dot(z, w2_ref[...], preferred_element_type=jnp.float32)
             + b2_ref[...])
    o_ref[...] = z                                           # (B, 128) lane-dense


# ------------------------------ params ----------------------------------------
def init_params():
    key = jax.random.PRNGKey(42)
    ks = jax.random.split(key, 10)
    bparams = {
        'conv_w': 0.1 * jax.random.normal(ks[0], (CONV_C, CONV_CIN, 3, 3), jnp.float32),
        'conv_b': 0.01 * jax.random.normal(ks[1], (CONV_C,), jnp.float32),
        'fc_w':   0.1 * jax.random.normal(ks[2], (CONV_C, FEAT_DIM), jnp.float32),
        'fc_b':   0.01 * jax.random.normal(ks[3], (1, FEAT_DIM), jnp.float32),
    }
    if not DEEP_END:
        hparams = {
            'w0': 0.05 * jax.random.normal(ks[4], (2 * IN_DIMS, OUT_DIM), jnp.float32),
            'b0': 0.01 * jax.random.normal(ks[5], (1, OUT_DIM), jnp.float32),
        }
    else:
        hparams = {
            'w0': 0.05 * jax.random.normal(ks[4], (2 * IN_DIMS, 1024), jnp.float32),
            'b0': 0.01 * jax.random.normal(ks[5], (1, 1024), jnp.float32),
            'w1': 0.05 * jax.random.normal(ks[6], (1024, 1024), jnp.float32),
            'b1': 0.01 * jax.random.normal(ks[7], (1, 1024), jnp.float32),
            'w2': 0.05 * jax.random.normal(ks[8], (1024, OUT_DIM), jnp.float32),
            'b2': 0.01 * jax.random.normal(ks[9], (1, OUT_DIM), jnp.float32),
        }
    return bparams, hparams


def prepare_params(bp, hp):
    """One-time weight preprocessing into the kernel's MXU-friendly layouts."""
    w_hwio = jnp.transpose(bp['conv_w'], (2, 3, 1, 0))       # (kh, kw, cin, cout)
    wp = W_IMG + 2

    def band_for_dh(w_dh):                                   # (3, cin, cout)
        # W_band[jw*Cin + c, j*Cout + o] = w_dh[jw - j, c, o] if 0 <= jw-j <= 2
        wflat = w_dh.reshape(3 * CONV_CIN, CONV_C)
        cols = []
        for j in range(W_IMG):
            blk = jnp.zeros((wp * CONV_CIN, CONV_C), jnp.float32)
            blk = blk.at[j * CONV_CIN:(j + 3) * CONV_CIN, :].set(wflat)
            cols.append(blk)
        return jnp.concatenate(cols, axis=1)                 # ((W+2)*Cin, W*Cout)

    # Fuse the three dh bands along K into one (K_PAD, N_CONV) matrix.
    w_fused = jnp.concatenate([band_for_dh(w_hwio[dh]) for dh in range(3)], axis=0)
    w_fused = jnp.pad(w_fused, ((0, K_PAD - K_CONV), (0, 0)))        # (256, 256)

    brow = jnp.tile(bp['conv_b'], (W_IMG,)).reshape(1, W_IMG * CONV_C)
    fcw_exp = jnp.tile(bp['fc_w'], (W_IMG, 1)) / float(W_IMG)        # (W*Cout, FEAT)

    def pad_cols(w, bvec):                                   # lane-dense head output
        wpad = jnp.zeros((w.shape[0], OUT_PAD), jnp.float32).at[:, :w.shape[1]].set(w)
        bpad = jnp.zeros((1, OUT_PAD), jnp.float32).at[:, :bvec.shape[1]].set(bvec)
        return wpad, bpad

    if not DEEP_END:
        w0p, b0p = pad_cols(hp['w0'], hp['b0'])
        head = (w0p, b0p)
    else:
        w2p, b2p = pad_cols(hp['w2'], hp['b2'])
        head = (hp['w0'], hp['b0'], hp['w1'], hp['b1'], w2p, b2p)

    return {'w_fused': w_fused, 'brow': brow, 'fcw_exp': fcw_exp,
            'fc_b': bp['fc_b'], 'head': head}


# ------------------------------ forward wrapper --------------------------------
@jax.jit
def model_forward(x, y, prep):
    B = x.shape[0]
    n_img = 2 * B
    # Batch the siamese pair; NCHW -> NHWC; SAME padding.
    imgs = jnp.concatenate([x, y], axis=0)
    imgs = jnp.transpose(imgs, (0, 2, 3, 1)).astype(jnp.float32)
    assert imgs.shape[1:] == (H_IMG, W_IMG, CONV_CIN), imgs.shape
    imgs = jnp.pad(imgs, ((0, 0), (1, 1), (1, 1), (0, 0)))
    imgs_flat = imgs.reshape(n_img, H_IMG + 2, (W_IMG + 2) * CONV_CIN)
    # Fused-K conv LHS: lane-concat the 3 dh row-windows (K=162), zero-pad to 256.
    lhs = jnp.concatenate([imgs_flat[:, dh:dh + H_IMG, :] for dh in range(3)],
                          axis=-1)
    lhs = jnp.pad(lhs, ((0, 0), (0, 0), (0, K_PAD - K_CONV)))
    lhs = lhs.reshape(n_img * H_IMG, K_PAD)                  # (2B*H, 256)

    # Images per grid step (M = TB*H_IMG rows per conv matmul).
    if n_img % 16 == 0:
        TB = 16                                              # M = 256 (v6e/v7x MXU)
    elif n_img % 8 == 0:
        TB = 8                                               # M = 128 (v5e MXU)
    else:
        TB = n_img                                           # tiny batch: one step
    NB = n_img // TB
    # Block-diagonal 1/H pooling matrix: per-image H-mean as a matmul.
    pool_mat = (jnp.kron(jnp.eye(TB, dtype=jnp.float32),
                         jnp.ones((1, H_IMG), jnp.float32)) / float(H_IMG))

    # --- call 1: backbone over a "parallel" image grid (megacore-friendly) ----
    feat = pl.pallas_call(
        _backbone_kernel,
        out_shape=jax.ShapeDtypeStruct((n_img, FEAT_DIM), jnp.float32),
        grid=(NB,),
        in_specs=[
            pl.BlockSpec((TB * H_IMG, K_PAD), lambda i: (i, 0)),   # image LHS tile
            pl.BlockSpec((K_PAD, N_CONV), lambda i: (0, 0)),       # fused conv weight
            pl.BlockSpec((1, N_CONV), lambda i: (0, 0)),           # conv bias row
            pl.BlockSpec((TB, TB * H_IMG), lambda i: (0, 0)),      # pooling matrix
            pl.BlockSpec((N_CONV, FEAT_DIM), lambda i: (0, 0)),    # folded GAP->FC w
            pl.BlockSpec((1, FEAT_DIM), lambda i: (0, 0)),         # fc bias
        ],
        out_specs=pl.BlockSpec((TB, FEAT_DIM), lambda i: (i, 0)),
        compiler_params=pltpu.CompilerParams(
            dimension_semantics=("parallel",)),
    )(lhs, prep['w_fused'], prep['brow'], pool_mat, prep['fcw_exp'], prep['fc_b'])

    # --- call 2: head (Model's own compute); tiny, single step ----------------
    head_ws = prep['head']
    out_pad = pl.pallas_call(
        _head_kernel,
        out_shape=jax.ShapeDtypeStruct((B, OUT_PAD), jnp.float32),
        grid=(1,),
        in_specs=([pl.BlockSpec(feat.shape, lambda i: (0, 0))]
                  + [pl.BlockSpec(a.shape, lambda i: (0, 0)) for a in head_ws]),
        out_specs=pl.BlockSpec((B, OUT_PAD), lambda i: (0, 0)),
        compiler_params=pltpu.CompilerParams(
            dimension_semantics=("arbitrary",)),
    )(feat, *head_ws)

    return out_pad[:, :OUT_DIM]


# ------------------------------ pure-JAX reference -----------------------------
def _reference(x, y, bp, hp):
    def bb(img):
        xi = jnp.transpose(img, (0, 2, 3, 1)).astype(jnp.float32)
        w_hwio = jnp.transpose(bp['conv_w'], (2, 3, 1, 0))
        h = jax.lax.conv_general_dilated(
            xi, w_hwio, (1, 1), 'SAME',
            dimension_numbers=('NHWC', 'HWIO', 'NHWC'),
            precision=jax.lax.Precision.HIGHEST)
        h = jnp.maximum(h + bp['conv_b'].reshape(1, 1, 1, -1), 0.0)
        p = jnp.mean(h, axis=(1, 2))
        return jnp.dot(p, bp['fc_w'], precision=jax.lax.Precision.HIGHEST) + bp['fc_b']
    fx, fy = bb(x), bb(y)
    if not INV_PART:
        ox, oy = fx[:, FEAT_DIM - EQUI_DIMS:], fy[:, FEAT_DIM - EQUI_DIMS:]
    else:
        ox, oy = fx[:, :FEAT_DIM - EQUI_DIMS], fy[:, :FEAT_DIM - EQUI_DIMS]
    cat = jnp.concatenate([ox, oy], axis=1)
    h = cat
    if not DEEP_END:
        return jnp.dot(h, hp['w0'], precision=jax.lax.Precision.HIGHEST) + hp['b0']
    h = jnp.maximum(jnp.dot(h, hp['w0'], precision=jax.lax.Precision.HIGHEST) + hp['b0'], 0.0)
    h = jnp.maximum(jnp.dot(h, hp['w1'], precision=jax.lax.Precision.HIGHEST) + hp['b1'], 0.0)
    return jnp.dot(h, hp['w2'], precision=jax.lax.Precision.HIGHEST) + hp['b2']


# ----------------------------------- main --------------------------------------
if __name__ == "__main__":
    key = jax.random.PRNGKey(0)
    kx, ky = jax.random.split(key)
    # Small NCHW image pair, consistent with the siamese forward(x, y).
    x = jax.random.normal(kx, (2, 3, H_IMG, W_IMG), jnp.float32)
    y = jax.random.normal(ky, (2, 3, H_IMG, W_IMG), jnp.float32)

    bparams, hparams = init_params()
    prep = prepare_params(bparams, hparams)

    out = model_forward(x, y, prep)
    out = jax.block_until_ready(out)

    ref = _reference(x, y, bparams, hparams)
    assert out.shape == (2, OUT_DIM), out.shape
    assert jnp.allclose(out, ref, rtol=2e-3, atol=2e-3), \
        f"mismatch: max abs err {jnp.max(jnp.abs(out - ref))}"

    print("KERNEL_OK")
</pallas_src>

<mosaic_0001>
module attributes {stable_mosaic.version = 11 : i64} {
  func.func @_backbone_kernel(%arg0: i32, %arg1: memref<64x256xf32, #tpu.memory_space<vmem>>, %arg2: memref<256x256xf32, #tpu.memory_space<vmem>>, %arg3: memref<1x256xf32, #tpu.memory_space<vmem>>, %arg4: memref<4x64xf32, #tpu.memory_space<vmem>>, %arg5: memref<256x512xf32, #tpu.memory_space<vmem>>, %arg6: memref<1x512xf32, #tpu.memory_space<vmem>>, %arg7: memref<4x512xf32, #tpu.memory_space<vmem>>) attributes {dimension_semantics = [#tpu.dimension_semantics<parallel>], iteration_bounds = array<i64: 1>, scalar_prefetch = 0 : i64, scratch_operands = 0 : i64, tpu.core_type = #tpu.core_type<tc>, window_params = [{transform_indices = @transform_0, window_bounds = array<i64: 64, 256>}, {pipeline_mode = #tpu.pipeline_mode<synchronous>, transform_indices = @transform_1, window_bounds = array<i64: 256, 256>}, {pipeline_mode = #tpu.pipeline_mode<synchronous>, transform_indices = @transform_2, window_bounds = array<i64: 1, 256>}, {pipeline_mode = #tpu.pipeline_mode<synchronous>, transform_indices = @transform_3, window_bounds = array<i64: 4, 64>}, {pipeline_mode = #tpu.pipeline_mode<synchronous>, transform_indices = @transform_4, window_bounds = array<i64: 256, 512>}, {pipeline_mode = #tpu.pipeline_mode<synchronous>, transform_indices = @transform_5, window_bounds = array<i64: 1, 512>}, {transform_indices = @transform_6, window_bounds = array<i64: 4, 512>}]} {
    %c0 = arith.constant 0 : index
    %c0_0 = arith.constant 0 : index
    %0 = vector.load %arg1[%c0, %c0_0] : memref<64x256xf32, #tpu.memory_space<vmem>>, vector<64x256xf32>
    %c0_1 = arith.constant 0 : index
    %c0_2 = arith.constant 0 : index
    %1 = vector.load %arg2[%c0_1, %c0_2] : memref<256x256xf32, #tpu.memory_space<vmem>>, vector<256x256xf32>
    %cst = arith.constant dense<0.000000e+00> : vector<64x256xf32>
    %2 = tpu.matmul %0, %1, %cst {dimension_numbers = #tpu.dot_dimension_numbers<[1], [0], [0], [1], [0, 0, 1, 1], [], []>} : vector<64x256xf32>, vector<256x256xf32>, vector<64x256xf32> -> vector<64x256xf32>
    %c0_3 = arith.constant 0 : index
    %c0_4 = arith.constant 0 : index
    %3 = vector.load %arg3[%c0_3, %c0_4] : memref<1x256xf32, #tpu.memory_space<vmem>>, vector<1x256xf32>
    %4 = vector.broadcast %3 : vector<1x256xf32> to vector<64x256xf32>
    %5 = arith.addf %2, %4 : vector<64x256xf32>
    %cst_5 = arith.constant 0.000000e+00 : f32
    %6 = vector.broadcast %cst_5 : f32 to vector<64x256xf32>
    %7 = arith.maximumf %5, %6 : vector<64x256xf32>
    %c0_6 = arith.constant 0 : index
    %c0_7 = arith.constant 0 : index
    %8 = vector.load %arg4[%c0_6, %c0_7] : memref<4x64xf32, #tpu.memory_space<vmem>>, vector<4x64xf32>
    %cst_8 = arith.constant dense<0.000000e+00> : vector<4x256xf32>
    %9 = tpu.matmul %8, %7, %cst_8 {dimension_numbers = #tpu.dot_dimension_numbers<[1], [0], [0], [1], [0, 0, 1, 1], [], []>} : vector<4x64xf32>, vector<64x256xf32>, vector<4x256xf32> -> vector<4x256xf32>
    %c0_9 = arith.constant 0 : index
    %c0_10 = arith.constant 0 : index
    %10 = vector.load %arg5[%c0_9, %c0_10] : memref<256x512xf32, #tpu.memory_space<vmem>>, vector<256x512xf32>
    %cst_11 = arith.constant dense<0.000000e+00> : vector<4x512xf32>
    %11 = tpu.matmul %9, %10, %cst_11 {dimension_numbers = #tpu.dot_dimension_numbers<[1], [0], [0], [1], [0, 0, 1, 1], [], []>} : vector<4x256xf32>, vector<256x512xf32>, vector<4x512xf32> -> vector<4x512xf32>
    %c0_12 = arith.constant 0 : index
    %c0_13 = arith.constant 0 : index
    %12 = vector.load %arg6[%c0_12, %c0_13] : memref<1x512xf32, #tpu.memory_space<vmem>>, vector<1x512xf32>
    %13 = vector.broadcast %12 : vector<1x512xf32> to vector<4x512xf32>
    %14 = arith.addf %11, %13 : vector<4x512xf32>
    %c0_14 = arith.constant 0 : index
    %c0_15 = arith.constant 0 : index
    %15 = vector.load %arg7[%c0_14, %c0_15] : memref<4x512xf32, #tpu.memory_space<vmem>>, vector<4x512xf32>
    tpu.vector_store %arg7[%c0_14, %c0_15], %14 {strides = array<i32>} : memref<4x512xf32, #tpu.memory_space<vmem>>, vector<4x512xf32>,
    return
  }
  func.func @transform_0(%arg0: i32) -> (i32, i32) {
    %c0_i32 = arith.constant 0 : i32
    %c0_i32_0 = arith.constant 0 : i32
    return %arg0, %c0_i32 : i32, i32
  }
  func.func @transform_1(%arg0: i32) -> (i32, i32) {
    %c0_i32 = arith.constant 0 : i32
    %c0_i32_0 = arith.constant 0 : i32
    %c0_i32_1 = arith.constant 0 : i32
    return %c0_i32, %c0_i32_0 : i32, i32
  }
  func.func @transform_2(%arg0: i32) -> (i32, i32) {
    %c0_i32 = arith.constant 0 : i32
    %c0_i32_0 = arith.constant 0 : i32
    %c0_i32_1 = arith.constant 0 : i32
    return %c0_i32, %c0_i32_0 : i32, i32
  }
  func.func @transform_3(%arg0: i32) -> (i32, i32) {
    %c0_i32 = arith.constant 0 : i32
    %c0_i32_0 = arith.constant 0 : i32
    %c0_i32_1 = arith.constant 0 : i32
    return %c0_i32, %c0_i32_0 : i32, i32
  }
  func.func @transform_4(%arg0: i32) -> (i32, i32) {
    %c0_i32 = arith.constant 0 : i32
    %c0_i32_0 = arith.constant 0 : i32
    %c0_i32_1 = arith.constant 0 : i32
    return %c0_i32, %c0_i32_0 : i32, i32
  }
  func.func @transform_5(%arg0: i32) -> (i32, i32) {
    %c0_i32 = arith.constant 0 : i32
    %c0_i32_0 = arith.constant 0 : i32
    %c0_i32_1 = arith.constant 0 : i32
    return %c0_i32, %c0_i32_0 : i32, i32
  }
  func.func @transform_6(%arg0: i32) -> (i32, i32) {
    %c0_i32 = arith.constant 0 : i32
    %c0_i32_0 = arith.constant 0 : i32
    return %arg0, %c0_i32 : i32, i32
  }
}

module attributes {stable_mosaic.version = 11 : i64} {
  func.func @_head_kernel(%arg0: i32, %arg1: memref<4x512xf32, #tpu.memory_space<vmem>>, %arg2: memref<512x128xf32, #tpu.memory_space<vmem>>, %arg3: memref<1x128xf32, #tpu.memory_space<vmem>>, %arg4: memref<2x128xf32, #tpu.memory_space<vmem>>) attributes {dimension_semantics = [#tpu.dimension_semantics<arbitrary>], iteration_bounds = array<i64: 1>, scalar_prefetch = 0 : i64, scratch_operands = 0 : i64, tpu.core_type = #tpu.core_type<tc>, window_params = [{pipeline_mode = #tpu.pipeline_mode<synchronous>, transform_indices = @transform_0, window_bounds = array<i64: 4, 512>}, {pipeline_mode = #tpu.pipeline_mode<synchronous>, transform_indices = @transform_1, window_bounds = array<i64: 512, 128>}, {pipeline_mode = #tpu.pipeline_mode<synchronous>, transform_indices = @transform_2, window_bounds = array<i64: 1, 128>}, {pipeline_mode = #tpu.pipeline_mode<synchronous>, transform_indices = @transform_3, window_bounds = array<i64: 2, 128>}]} {
    %c0 = arith.constant 0 : index
    %c0_0 = arith.constant 0 : index
    %0 = vector.load %arg1[%c0, %c0_0] : memref<4x512xf32, #tpu.memory_space<vmem>>, vector<4x512xf32>
    %1 = vector.extract_strided_slice %0 {offsets = [0, 256], sizes = [2, 256], strides = [1, 1]} : vector<4x512xf32> to vector<2x256xf32>
    %2 = vector.extract_strided_slice %0 {offsets = [2, 256], sizes = [2, 256], strides = [1, 1]} : vector<4x512xf32> to vector<2x256xf32>
    %c0_1 = arith.constant 0 : index
    %c0_2 = arith.constant 0 : index
    %3 = vector.load %arg2[%c0_1, %c0_2] : memref<512x128xf32, #tpu.memory_space<vmem>>, vector<256x128xf32>
    %cst = arith.constant dense<0.000000e+00> : vector<2x128xf32>
    %4 = tpu.matmul %1, %3, %cst {dimension_numbers = #tpu.dot_dimension_numbers<[1], [0], [0], [1], [0, 0, 1, 1], [], []>} : vector<2x256xf32>, vector<256x128xf32>, vector<2x128xf32> -> vector<2x128xf32>
    %c256 = arith.constant 256 : index
    %c0_3 = arith.constant 0 : index
    %5 = vector.load %arg2[%c256, %c0_3] : memref<512x128xf32, #tpu.memory_space<vmem>>, vector<256x128xf32>
    %cst_4 = arith.constant dense<0.000000e+00> : vector<2x128xf32>
    %6 = tpu.matmul %2, %5, %cst_4 {dimension_numbers = #tpu.dot_dimension_numbers<[1], [0], [0], [1], [0, 0, 1, 1], [], []>} : vector<2x256xf32>, vector<256x128xf32>, vector<2x128xf32> -> vector<2x128xf32>
    %7 = arith.addf %4, %6 : vector<2x128xf32>
    %c0_5 = arith.constant 0 : index
    %c0_6 = arith.constant 0 : index
    %8 = vector.load %arg3[%c0_5, %c0_6] : memref<1x128xf32, #tpu.memory_space<vmem>>, vector<1x128xf32>
    %9 = vector.broadcast %8 : vector<1x128xf32> to vector<2x128xf32>
    %10 = arith.addf %7, %9 : vector<2x128xf32>
    %c0_7 = arith.constant 0 : index
    %c0_8 = arith.constant 0 : index
    %11 = vector.load %arg4[%c0_7, %c0_8] : memref<2x128xf32, #tpu.memory_space<vmem>>, vector<2x128xf32>
    tpu.vector_store %arg4[%c0_7, %c0_8], %10 {strides = array<i32>} : memref<2x128xf32, #tpu.memory_space<vmem>>, vector<2x128xf32>,
    return
  }
  func.func @transform_0(%arg0: i32) -> (i32, i32) {
    %c0_i32 = arith.constant 0 : i32
    %c0_i32_0 = arith.constant 0 : i32
    %c0_i32_1 = arith.constant 0 : i32
    return %c0_i32, %c0_i32_0 : i32, i32
  }
  func.func @transform_1(%arg0: i32) -> (i32, i32) {
    %c0_i32 = arith.constant 0 : i32
    %c0_i32_0 = arith.constant 0 : i32
    %c0_i32_1 = arith.constant 0 : i32
    return %c0_i32, %c0_i32_0 : i32, i32
  }
  func.func @transform_2(%arg0: i32) -> (i32, i32) {
    %c0_i32 = arith.constant 0 : i32
    %c0_i32_0 = arith.constant 0 : i32
    %c0_i32_1 = arith.constant 0 : i32
    return %c0_i32, %c0_i32_0 : i32, i32
  }
  func.func @transform_3(%arg0: i32) -> (i32, i32) {
    %c0_i32 = arith.constant 0 : i32
    %c0_i32_0 = arith.constant 0 : i32
    %c0_i32_1 = arith.constant 0 : i32
    return %c0_i32, %c0_i32_0 : i32, i32
  }
}

</mosaic_0001>

<bundles_post_ra>
// kernel: model_forward.3
= control target key start
LH: loop header
LB: loop body
LE: loop exit
PB: predicated region body
PF: predicated region fallthrough
CT: control target
= control target key end

     0   :  { %s567_s0 = inlined_call_operand.vmem [shape: f32[4,512], index: 0, kind: input, shape index: {}]   ;;  %s568_s1 = inlined_call_operand.vmem [shape: f32[512,128], index: 1, kind: input, shape index: {}]   ;;  %s569_s2 = inlined_call_operand.vmem [shape: f32[1,128], index: 2, kind: input, shape index: {}]   ;;  %s570_s3 = inlined_call_operand.hbm [shape: f32[2,128], index: 3, kind: output, shape index: {}]  }
   0x1   :  { %v79_v0 = vld [vmem:[%s568_s1 + $0x1f8] sm:$0xff]  ;;  %v78_v4 = vld [vmem:[%s568_s1 + $0x1f0] sm:$0xff]  ;;  %v77_v8 = vld [vmem:[%s568_s1 + $0x1e8] sm:$0xff] }
   0x2   :  { %v47_v1 = vld [vmem:[%s568_s1 + $0xf8] sm:$0xff]  ;;  %251 = vmatprep.subr.mxu0 %v79_v0  ;;  %v46_v5 = vld [vmem:[%s568_s1 + $0xf0] sm:$0xff]  ;;  %v45_v9 = vld [vmem:[%s568_s1 + $0xe8] sm:$0xff] }
   0x3   :  { %v63_v2 = vld [vmem:[%s568_s1 + $0x178] sm:$0xff]  ;;  %286 = vmatprep.subr.mxu1 %v47_v1  ;;  %v62_v6 = vld [vmem:[%s568_s1 + $0x170] sm:$0xff]  ;;  %v61_v10 = vld [vmem:[%s568_s1 + $0x168] sm:$0xff] }
   0x4   :  { %v31_v3 = vld [vmem:[%s568_s1 + $0x78] sm:$0xff]  ;;  %252 = vmatpush3.msra.mxu0 %v63_v2  ;;  %v30_v7 = vld [vmem:[%s568_s1 + $0x70] sm:$0xff]  ;;  %v29_v11 = vld [vmem:[%s568_s1 + $0x68] sm:$0xff] }
   0x5   :  { %287 = vmatpush3.msra.mxu1 %v31_v3  ;;  %253 = vmatprep.subr.mxu0 %v78_v4  ;;  %v76_v12 = vld [vmem:[%s568_s1 + $0x1e0] sm:$0xff]  ;;  %v75_v16 = vld [vmem:[%s568_s1 + $0x1d8] sm:$0xff]  ;;  %v74_v20 = vld [vmem:[%s568_s1 + $0x1d0] sm:$0xff] }
   0x6   :  { %288 = vmatprep.subr.mxu1 %v46_v5  ;;  %254 = vmatpush3.msra.mxu0 %v62_v6  ;;  %v44_v13 = vld [vmem:[%s568_s1 + $0xe0] sm:$0xff]  ;;  %v43_v17 = vld [vmem:[%s568_s1 + $0xd8] sm:$0xff]  ;;  %v42_v21 = vld [vmem:[%s568_s1 + $0xd0] sm:$0xff] }
   0x7   :  { %289 = vmatpush3.msra.mxu1 %v30_v7  ;;  %255 = vmatprep.subr.mxu0 %v77_v8  ;;  %v60_v14 = vld [vmem:[%s568_s1 + $0x160] sm:$0xff]  ;;  %v59_v18 = vld [vmem:[%s568_s1 + $0x158] sm:$0xff]  ;;  %v58_v22 = vld [vmem:[%s568_s1 + $0x150] sm:$0xff] }
   0x8   :  { %290 = vmatprep.subr.mxu1 %v45_v9  ;;  %v28_v15 = vld [vmem:[%s568_s1 + $0x60] sm:$0xff]  ;;  %256 = vmatpush3.msra.mxu0 %v61_v10  ;;  %v27_v19 = vld [vmem:[%s568_s1 + $0x58] sm:$0xff]  ;;  %v26_v23 = vld [vmem:[%s568_s1 + $0x50] sm:$0xff] }
   0x9   :  { %291 = vmatpush3.msra.mxu1 %v29_v11  ;;  %257 = vmatprep.subr.mxu0 %v76_v12  ;;  %v73_v24 = vld [vmem:[%s568_s1 + $0x1c8] sm:$0xff]  ;;  %v72_v28 = vld [vmem:[%s568_s1 + $0x1c0] sm:$0xff]  ;;  %v71_v32 = vld [vmem:[%s568_s1 + $0x1b8] sm:$0xff] }
   0xa   :  { %292 = vmatprep.subr.mxu1 %v44_v13  ;;  %258 = vmatpush3.msra.mxu0 %v60_v14  ;;  %v41_v25 = vld [vmem:[%s568_s1 + $0xc8] sm:$0xff]  ;;  %v40_v29 = vld [vmem:[%s568_s1 + $0xc0] sm:$0xff]  ;;  %v39_v33 = vld [vmem:[%s568_s1 + $0xb8] sm:$0xff] }
   0xb   :  { %293 = vmatpush3.msra.mxu1 %v28_v15  ;;  %259 = vmatprep.subr.mxu0 %v75_v16  ;;  %v57_v26 = vld [vmem:[%s568_s1 + $0x148] sm:$0xff]  ;;  %v56_v30 = vld [vmem:[%s568_s1 + $0x140] sm:$0xff]  ;;  %v55_v34 = vld [vmem:[%s568_s1 + $0x138] sm:$0xff] }
   0xc   :  { %294 = vmatprep.subr.mxu1 %v43_v17  ;;  %260 = vmatpush3.msra.mxu0 %v59_v18  ;;  %v25_v27 = vld [vmem:[%s568_s1 + $0x48] sm:$0xff]  ;;  %v24_v31 = vld [vmem:[%s568_s1 + $0x40] sm:$0xff]  ;;  %v23_v35 = vld [vmem:[%s568_s1 + $0x38] sm:$0xff] }
   0xd   :  { %295 = vmatpush3.msra.mxu1 %v27_v19  ;;  %261 = vmatprep.subr.mxu0 %v74_v20  ;;  %v70_v36 = vld [vmem:[%s568_s1 + $0x1b0] sm:$0xff]  ;;  %v69_v40 = vld [vmem:[%s568_s1 + $0x1a8] sm:$0xff]  ;;  %v68_v44 = vld [vmem:[%s568_s1 + $0x1a0] sm:$0xff] }
   0xe   :  { %296 = vmatprep.subr.mxu1 %v42_v21  ;;  %262 = vmatpush3.msra.mxu0 %v58_v22  ;;  %v38_v37 = vld [vmem:[%s568_s1 + $0xb0] sm:$0xff]  ;;  %v37_v41 = vld [vmem:[%s568_s1 + $0xa8] sm:$0xff]  ;;  %v36_v45 = vld [vmem:[%s568_s1 + $0xa0] sm:$0xff] }
   0xf   :  { %297 = vmatpush3.msra.mxu1 %v26_v23  ;;  %263 = vmatprep.subr.mxu0 %v73_v24  ;;  %v54_v38 = vld [vmem:[%s568_s1 + $0x130] sm:$0xff]  ;;  %v53_v42 = vld [vmem:[%s568_s1 + $0x128] sm:$0xff]  ;;  %v52_v46 = vld [vmem:[%s568_s1 + $0x120] sm:$0xff] }
  0x10   :  { %298 = vmatprep.subr.mxu1 %v41_v25  ;;  %264 = vmatpush3.msra.mxu0 %v57_v26  ;;  %v22_v39 = vld [vmem:[%s568_s1 + $0x30] sm:$0xff]  ;;  %v21_v43 = vld [vmem:[%s568_s1 + $0x28] sm:$0xff]  ;;  %v20_v47 = vld [vmem:[%s568_s1 + $0x20] sm:$0xff] }
  0x11   :  { %299 = vmatpush3.msra.mxu1 %v25_v27  ;;  %265 = vmatprep.subr.mxu0 %v72_v28  ;;  %v15_v48 = vld [vmem:[%s567_s0 + $0x8] sm:$0xff] }
  0x12   :  { %300 = vmatprep.subr.mxu1 %v40_v29  ;;  %266 = vmatpush3.msra.mxu0 %v56_v30 }
  0x13   :  { %301 = vmatpush3.msra.mxu1 %v24_v31  ;;  %267 = vmatprep.subr.mxu0 %v71_v32 }
  0x14   :  { %302 = vmatprep.subr.mxu1 %v39_v33  ;;  %268 = vmatpush3.msra.mxu0 %v55_v34 }
  0x15   :  { %303 = vmatpush3.msra.mxu1 %v23_v35  ;;  %269 = vmatprep.subr.mxu0 %v70_v36 }
  0x16   :  { %304 = vmatprep.subr.mxu1 %v38_v37  ;;  %270 = vmatpush3.msra.mxu0 %v54_v38 }
  0x17   :  { %305 = vmatpush3.msra.mxu1 %v22_v39  ;;  %271 = vmatprep.subr.mxu0 %v69_v40 }
  0x18   :  { %306 = vmatprep.subr.mxu1 %v37_v41 }
  0x19   :  { %8 = vsyncpa [#allocation3], 0  ;;  %272 = vmatpush3.msra.mxu0 %v53_v42  ;;  %307 = vmatpush3.msra.mxu1 %v21_v43  ;;  %v67_v49 = vld [vmem:[%s568_s1 + $0x198] sm:$0xff]  ;;  %v66_v53 = vld [vmem:[%s568_s1 + $0x190] sm:$0xff]  ;;  %v81_v55 = vcombine.high %v15_v48, %v15_v48  ;;  %v82_v3 = vrot.slane %v15_v48, 2 }
  0x1a   :  { %v35_v50 = vld [vmem:[%s568_s1 + $0x98] sm:$0xff]  ;;  %273 = vmatprep.subr.mxu0 %v68_v44  ;;  %308 = vmatprep.subr.mxu1 %v36_v45  ;;  %v34_v54 = vld [vmem:[%s568_s1 + $0x90] sm:$0xff]  ;;  %v65_v58 = vld [vmem:[%s568_s1 + $0x188] sm:$0xff] }
  0x1b   :  { %v51_v51 = vld [vmem:[%s568_s1 + $0x118] sm:$0xff]  ;;  %274 = vmatpush3.msra.mxu0 %v52_v46  ;;  %309 = vmatpush3.msra.mxu1 %v20_v47  ;;  %v50_v56 = vld [vmem:[%s568_s1 + $0x110] sm:$0xff]  ;;  %v33_v59 = vld [vmem:[%s568_s1 + $0x88] sm:$0xff]  ;;  %v83_v0 = vrot.slane %v81_v55, 2 }
  0x1c   :  { %v19_v52 = vld [vmem:[%s568_s1 + $0x18] sm:$0xff]  ;;  %275 = vmatprep.subr.mxu0 %v67_v49  ;;  %310 = vmatprep.subr.mxu1 %v35_v50  ;;  %v18_v57 = vld [vmem:[%s568_s1 + $0x10] sm:$0xff]  ;;  %v49_v60 = vld [vmem:[%s568_s1 + $0x108] sm:$0xff] }
  0x1d   :  { %276 = vmatpush3.msra.mxu0 %v51_v51  ;;  %311 = vmatpush3.msra.mxu1 %v19_v52  ;;  %v17_v61 = vld [vmem:[%s568_s1 + $0x8] sm:$0xff]  ;;  %v64_v62 = vld [vmem:[%s568_s1 + $0x180] sm:$0xff] }
  0x1e   :  { %277 = vmatprep.subr.mxu0 %v66_v53  ;;  %312 = vmatprep.subr.mxu1 %v34_v54  ;;  %v32_v63 = vld [vmem:[%s568_s1 + $0x80] sm:$0xff] }
  0x1f   :  { %278 = vmatpush3.msra.mxu0 %v50_v56  ;;  %313 = vmatpush3.msra.mxu1 %v18_v57  ;;  %v48_v1 = vld [vmem:[%s568_s1 + $0x100] sm:$0xff] }
  0x20   :  { %279 = vmatprep.subr.mxu0 %v65_v58  ;;  %314 = vmatprep.subr.mxu1 %v33_v59  ;;  %v16_v2 = vld [vmem:[%s568_s1] sm:$0xff]  ;;  %s345_s1 = smov [#allocation2]  }
  0x21   :  { %280 = vmatpush3.msra.mxu0 %v49_v60  ;;  %315 = vmatpush3.msra.mxu1 %v17_v61  ;;  %v250_v10 = vld [vmem:[%s569_s2] ss:$0 sm:$0xff]  ;;  %s242_s8 = sshll.u32 %s345_s1, 4  ;;  %s243_s8 = int_to_ptr.vmem [resolvable:$true] %s242_s8 }
  0x22   :  { %281 = vmatprep.subr.mxu0 %v64_v62  ;;  %316 = vmatprep.subr.mxu1 %v32_v63  ;;  %s323_s9 = scalar_lea.vmem %s243_s8, 32  ;;  %p328_p1 = scmp.lt.s32.totalorder %s243_s8, %s243_s8 }
  0x23   :  { %282 = vmatpush3.msra.mxu0 %v48_v1  ;;  %150 = vmatprep.mubr.f32.mxu0 %v83_v0  ;;  %p324_p0 = scmp.ne.s32.totalorder %s243_s8, %s323_s9  ;;  %p329_p2 = scmp.lt.s32.totalorder %s323_s9, %s323_s9 }
  0x24   :  { %317 = vmatpush3.msra.mxu1 %v16_v2  ;;  %221 = vmatprep.mubr.f32.mxu1 %v81_v55 }
  0x25   :  { %151 = vmatmul.mubr.f32.vlgmr.msra.gmra.mxu0 %v82_v3  ;;  %222 = vmatmul.mubr.f32.vlgmr.msra.gmra.mxu1 %v15_v48  ;;  %p330_p3 = por %p329_p2, %p328_p1 }
  0x27   :  { %p331_p4 = pnand %p330_p3, %p324_p0 }
  0xe5   :  { %v283_v4 = vpop.f32.mrf.mxu0  ;;  %v318_v5 = vpop.f32.mrf.mxu1 }
  0xe7   :  { %v284_v6 = vpop.f32.mrf.mxu0  ;;  %v319_v7 = vpop.f32.mrf.mxu1 }
  0xe8   :  { %v285_v8 = vadd.f32 %v284_v6, %v283_v4  ;;  %v320_v9 = vadd.f32 %v319_v7, %v318_v5 }
  0xea   :  { %v224_v11 = vadd.f32 %v320_v9, %v285_v8 }
  0xec   :  { %v234_v12 = vadd.f32 %v250_v10, %v224_v11 }
  0xee   :  { %235 = vst [vmem:[#allocation2] sm:$0x3] %v234_v12 }
  0xef   :  { %334 = shalt.err (!%p331_p4)
}
  0xf0   :  { %245 = dma.vmem_to_hbm [thread:$0]  %s243_s8, 32, %s570_s3, [#allocation3]  }
  0xf1   :  { %343 = dma.done.wait [#allocation3], 32  }
  0xf2   :  { %344 = vsyncadd [#allocation3], 4294967264 }
  0xf3   :  { %249 = vsyncpa [#allocation3], 1 }

// kernel: model_forward.2
= control target key start
LH: loop header
LB: loop body
LE: loop exit
PB: predicated region body
PF: predicated region fallthrough
CT: control target
= control target key end

     0   :  { %vm245_vm0 = vcmask 523264   ;;  %s1317_s1 = inlined_call_operand.vmem [shape: f32[256,256], index: 1, kind: input, shape index: {}]   ;;  %s1318_s0 = inlined_call_operand.vmem [shape: f32[64,256], index: 0, kind: input, shape index: {}]   ;;  %s1319_s4 = inlined_call_operand.vmem [shape: f32[256,512], index: 4, kind: input, shape index: {}]   ;;  %s1320_s2 = inlined_call_operand.vmem [shape: f32[1,256], index: 2, kind: input, shape index: {}]   ;;  %s1321_s3 = inlined_call_operand.vmem [shape: f32[4,64], index: 3, kind: input, shape index: {}]   ;;  %s1322_s5 = inlined_call_operand.vmem [shape: f32[1,512], index: 5, kind: input, shape index: {}]   ;;  %s1323_s6 = inlined_call_operand.vmem [shape: f32[4,512], index: 6, kind: output, shape index: {}]  }
   0x1   :  { %v70_v0 = vld [vmem:[%s1317_s1 + $0xf8] sm:$0xff]  ;;  %v69_v1 = vld [vmem:[%s1317_s1 + $0xf0] sm:$0xff]  ;;  %v68_v2 = vld [vmem:[%s1317_s1 + $0xe8] sm:$0xff] }
   0x2   :  { %115 = vmatprep.subr.mxu0 %v70_v0  ;;  %v67_v3 = vld [vmem:[%s1317_s1 + $0xe0] sm:$0xff]  ;;  %v66_v4 = vld [vmem:[%s1317_s1 + $0xd8] sm:$0xff]  ;;  %v65_v5 = vld [vmem:[%s1317_s1 + $0xd0] sm:$0xff] }
   0x3   :  { %116 = vmatpush1.msra.mxu0 %v69_v1  ;;  %v64_v6 = vld [vmem:[%s1317_s1 + $0xc8] sm:$0xff]  ;;  %v63_v7 = vld [vmem:[%s1317_s1 + $0xc0] sm:$0xff]  ;;  %v62_v8 = vld [vmem:[%s1317_s1 + $0xb8] sm:$0xff] }
   0x4   :  { %117 = vmatprep.subr.mxu0 %v68_v2  ;;  %v61_v9 = vld [vmem:[%s1317_s1 + $0xb0] sm:$0xff]  ;;  %v60_v10 = vld [vmem:[%s1317_s1 + $0xa8] sm:$0xff]  ;;  %v59_v11 = vld [vmem:[%s1317_s1 + $0xa0] sm:$0xff] }
   0x5   :  { %118 = vmatpush1.msra.mxu0 %v67_v3  ;;  %v58_v12 = vld [vmem:[%s1317_s1 + $0x98] sm:$0xff]  ;;  %v57_v13 = vld [vmem:[%s1317_s1 + $0x90] sm:$0xff]  ;;  %v56_v14 = vld [vmem:[%s1317_s1 + $0x88] sm:$0xff] }
   0x6   :  { %119 = vmatprep.subr.mxu0 %v66_v4  ;;  %v55_v15 = vld [vmem:[%s1317_s1 + $0x80] sm:$0xff]  ;;  %v54_v16 = vld [vmem:[%s1317_s1 + $0x78] sm:$0xff]  ;;  %v53_v17 = vld [vmem:[%s1317_s1 + $0x70] sm:$0xff] }
   0x7   :  { %120 = vmatpush1.msra.mxu0 %v65_v5  ;;  %v52_v18 = vld [vmem:[%s1317_s1 + $0x68] sm:$0xff]  ;;  %v51_v19 = vld [vmem:[%s1317_s1 + $0x60] sm:$0xff]  ;;  %v50_v20 = vld [vmem:[%s1317_s1 + $0x58] sm:$0xff] }
   0x8   :  { %121 = vmatprep.subr.mxu0 %v64_v6  ;;  %v49_v21 = vld [vmem:[%s1317_s1 + $0x50] sm:$0xff]  ;;  %v48_v22 = vld [vmem:[%s1317_s1 + $0x48] sm:$0xff]  ;;  %v47_v23 = vld [vmem:[%s1317_s1 + $0x40] sm:$0xff] }
   0x9   :  { %122 = vmatpush1.msra.mxu0 %v63_v7  ;;  %v24_v24 = vld [vmem:[%s1318_s0 + $0x8] sm:$0xff]  ;;  %v46_v25 = vld [vmem:[%s1317_s1 + $0x38] sm:$0xff]  ;;  %v45_v26 = vld [vmem:[%s1317_s1 + $0x30] sm:$0xff] }
   0xa   :  { %123 = vmatprep.subr.mxu0 %v62_v8  ;;  %179 = vmatprep.mubr.f32.mxu0 %v24_v24  ;;  %v44_v27 = vld [vmem:[%s1317_s1 + $0x28] sm:$0xff]  ;;  %v43_v28 = vld [vmem:[%s1317_s1 + $0x20] sm:$0xff]  ;;  %v42_v29 = vld [vmem:[%s1317_s1 + $0x18] sm:$0xff] }
   0xb   :  { %124 = vmatpush1.msra.mxu0 %v61_v9  ;;  %v41_v30 = vld [vmem:[%s1317_s1 + $0x10] sm:$0xff]  ;;  %v40_v31 = vld [vmem:[%s1317_s1 + $0x8] sm:$0xff]  ;;  %v39_v32 = vld [vmem:[%s1317_s1] sm:$0xff] }
   0xc   :  { %125 = vmatprep.subr.mxu0 %v60_v10  ;;  %v102_v33 = vld [vmem:[%s1317_s1 + $0x1f8] sm:$0xff]  ;;  %v101_v34 = vld [vmem:[%s1317_s1 + $0x1f0] sm:$0xff]  ;;  %v100_v35 = vld [vmem:[%s1317_s1 + $0x1e8] sm:$0xff] }
   0xd   :  { %126 = vmatpush1.msra.mxu0 %v59_v11  ;;  %v99_v36 = vld [vmem:[%s1317_s1 + $0x1e0] sm:$0xff]  ;;  %v98_v37 = vld [vmem:[%s1317_s1 + $0x1d8] sm:$0xff]  ;;  %v97_v38 = vld [vmem:[%s1317_s1 + $0x1d0] sm:$0xff] }
   0xe   :  { %127 = vmatprep.subr.mxu0 %v58_v12  ;;  %v96_v39 = vld [vmem:[%s1317_s1 + $0x1c8] sm:$0xff]  ;;  %v95_v40 = vld [vmem:[%s1317_s1 + $0x1c0] sm:$0xff]  ;;  %v94_v41 = vld [vmem:[%s1317_s1 + $0x1b8] sm:$0xff] }
   0xf   :  { %128 = vmatpush1.msra.mxu0 %v57_v13  ;;  %v93_v42 = vld [vmem:[%s1317_s1 + $0x1b0] sm:$0xff]  ;;  %v92_v43 = vld [vmem:[%s1317_s1 + $0x1a8] sm:$0xff]  ;;  %v91_v44 = vld [vmem:[%s1317_s1 + $0x1a0] sm:$0xff] }
  0x10   :  { %129 = vmatprep.subr.mxu0 %v56_v14  ;;  %v90_v45 = vld [vmem:[%s1317_s1 + $0x198] sm:$0xff]  ;;  %v89_v46 = vld [vmem:[%s1317_s1 + $0x190] sm:$0xff]  ;;  %v88_v47 = vld [vmem:[%s1317_s1 + $0x188] sm:$0xff] }
  0x11   :  { %130 = vmatpush1.msra.mxu0 %v55_v15  ;;  %v87_v48 = vld [vmem:[%s1317_s1 + $0x180] sm:$0xff]  ;;  %v86_v49 = vld [vmem:[%s1317_s1 + $0x178] sm:$0xff]  ;;  %v85_v50 = vld [vmem:[%s1317_s1 + $0x170] sm:$0xff] }
  0x12   :  { %131 = vmatprep.subr.mxu0 %v54_v16  ;;  %v84_v51 = vld [vmem:[%s1317_s1 + $0x168] sm:$0xff]  ;;  %v83_v52 = vld [vmem:[%s1317_s1 + $0x160] sm:$0xff]  ;;  %v82_v53 = vld [vmem:[%s1317_s1 + $0x158] sm:$0xff]  ;;  %v628_v16 = vmov 0.0  }
  0x13   :  { %132 = vmatpush1.msra.mxu0 %v53_v17  ;;  %v81_v54 = vld [vmem:[%s1317_s1 + $0x150] sm:$0xff]  ;;  %v80_v55 = vld [vmem:[%s1317_s1 + $0x148] sm:$0xff]  ;;  %v79_v56 = vld [vmem:[%s1317_s1 + $0x140] sm:$0xff]  ;;  %313 = vmatprep.mubr.f32.mxu1 %v628_v16 }
  0x14   :  { %133 = vmatprep.subr.mxu0 %v52_v18  ;;  %v78_v57 = vld [vmem:[%s1317_s1 + $0x138] sm:$0xff]  ;;  %v77_v58 = vld [vmem:[%s1317_s1 + $0x130] sm:$0xff]  ;;  %v76_v59 = vld [vmem:[%s1317_s1 + $0x128] sm:$0xff] }
  0x15   :  { %134 = vmatpush1.msra.mxu0 %v51_v19  ;;  %v75_v60 = vld [vmem:[%s1317_s1 + $0x120] sm:$0xff]  ;;  %v74_v61 = vld [vmem:[%s1317_s1 + $0x118] sm:$0xff]  ;;  %v73_v62 = vld [vmem:[%s1317_s1 + $0x110] sm:$0xff] }
  0x16   :  { %135 = vmatprep.subr.mxu0 %v50_v20  ;;  %v72_v63 = vld [vmem:[%s1317_s1 + $0x108] sm:$0xff]  ;;  %v71_v0 = vld [vmem:[%s1317_s1 + $0x100] sm:$0xff]  ;;  %v26_v2 = vld [vmem:[%s1318_s0 + $0x18] sm:$0xff] }
  0x17   :  { %136 = vmatpush1.msra.mxu0 %v49_v21  ;;  %v23_v1 = vld [vmem:[%s1318_s0] sm:$0xff]  ;;  %v25_v3 = vld [vmem:[%s1318_s0 + $0x10] sm:$0xff]  ;;  %v28_v4 = vld [vmem:[%s1318_s0 + $0x28] sm:$0xff] }
  0x18   :  { %137 = vmatprep.subr.mxu0 %v48_v22  ;;  %v27_v5 = vld [vmem:[%s1318_s0 + $0x20] sm:$0xff]  ;;  %v30_v6 = vld [vmem:[%s1318_s0 + $0x38] sm:$0xff]  ;;  %v29_v7 = vld [vmem:[%s1318_s0 + $0x30] sm:$0xff] }
  0x19   :  { %138 = vmatpush1.msra.mxu0 %v47_v23  ;;  %v32_v8 = vld [vmem:[%s1318_s0 + $0x48] sm:$0xff]  ;;  %v31_v9 = vld [vmem:[%s1318_s0 + $0x40] sm:$0xff]  ;;  %v34_v10 = vld [vmem:[%s1318_s0 + $0x58] sm:$0xff] }
  0x1a   :  { %139 = vmatprep.subr.mxu0 %v46_v25  ;;  %v33_v11 = vld [vmem:[%s1318_s0 + $0x50] sm:$0xff]  ;;  %v36_v12 = vld [vmem:[%s1318_s0 + $0x68] sm:$0xff]  ;;  %v35_v13 = vld [vmem:[%s1318_s0 + $0x60] sm:$0xff] }
  0x1b   :  { %140 = vmatpush1.msra.mxu0 %v45_v26  ;;  %v38_v14 = vld [vmem:[%s1318_s0 + $0x78] sm:$0xff]  ;;  %v37_v15 = vld [vmem:[%s1318_s0 + $0x70] sm:$0xff] }
  0x1c   :  { %141 = vmatprep.subr.mxu0 %v44_v27  ;;  %v383_v17 = vld [vmem:[%s1319_s4 + $0x1f8] sm:$0xff]  ;;  %v382_v18 = vld [vmem:[%s1319_s4 + $0x1f0] sm:$0xff] }
  0x1d   :  { %142 = vmatpush1.msra.mxu0 %v43_v28  ;;  %v379_v19 = vld [vmem:[%s1319_s4 + $0x1d8] sm:$0xff]  ;;  %v378_v20 = vld [vmem:[%s1319_s4 + $0x1d0] sm:$0xff] }
  0x1e   :  { %143 = vmatprep.subr.mxu0 %v42_v29  ;;  %v375_v21 = vld [vmem:[%s1319_s4 + $0x1b8] sm:$0xff]  ;;  %v374_v22 = vld [vmem:[%s1319_s4 + $0x1b0] sm:$0xff] }
  0x1f   :  { %144 = vmatpush1.msra.mxu0 %v41_v30  ;;  %v371_v23 = vld [vmem:[%s1319_s4 + $0x198] sm:$0xff]  ;;  %v370_v24 = vld [vmem:[%s1319_s4 + $0x190] sm:$0xff] }
  0x20   :  { %145 = vmatprep.subr.mxu0 %v40_v31  ;;  %v367_v25 = vld [vmem:[%s1319_s4 + $0x178] sm:$0xff]  ;;  %v366_v26 = vld [vmem:[%s1319_s4 + $0x170] sm:$0xff] }
  0x21   :  { %146 = vmatpush1.msra.mxu0 %v39_v32  ;;  %v363_v27 = vld [vmem:[%s1319_s4 + $0x158] sm:$0xff]  ;;  %v362_v28 = vld [vmem:[%s1319_s4 + $0x150] sm:$0xff] }
  0x22   :  { %147 = vmatprep.subr.mxu0 %v102_v33  ;;  %v359_v29 = vld [vmem:[%s1319_s4 + $0x138] sm:$0xff]  ;;  %v358_v30 = vld [vmem:[%s1319_s4 + $0x130] sm:$0xff] }
  0x23   :  { %148 = vmatpush2.msra.mxu0 %v101_v34  ;;  %v355_v31 = vld [vmem:[%s1319_s4 + $0x118] sm:$0xff]  ;;  %v354_v32 = vld [vmem:[%s1319_s4 + $0x110] sm:$0xff] }
  0x24   :  { %149 = vmatprep.subr.mxu0 %v100_v35  ;;  %v351_v33 = vld [vmem:[%s1319_s4 + $0xf8] sm:$0xff]  ;;  %v350_v34 = vld [vmem:[%s1319_s4 + $0xf0] sm:$0xff] }
  0x25   :  { %150 = vmatpush2.msra.mxu0 %v99_v36  ;;  %v347_v35 = vld [vmem:[%s1319_s4 + $0xd8] sm:$0xff]  ;;  %v346_v36 = vld [vmem:[%s1319_s4 + $0xd0] sm:$0xff] }
  0x26   :  { %151 = vmatprep.subr.mxu0 %v98_v37  ;;  %v343_v37 = vld [vmem:[%s1319_s4 + $0xb8] sm:$0xff] }
  0x27   :  { %152 = vmatpush2.msra.mxu0 %v97_v38  ;;  %v342_v38 = vld [vmem:[%s1319_s4 + $0xb0] sm:$0xff] }
  0x28   :  { %153 = vmatprep.subr.mxu0 %v96_v39  ;;  %v339_v39 = vld [vmem:[%s1319_s4 + $0x98] sm:$0xff] }
  0x29   :  { %154 = vmatpush2.msra.mxu0 %v95_v40  ;;  %v338_v40 = vld [vmem:[%s1319_s4 + $0x90] sm:$0xff] }
  0x2a   :  { %155 = vmatprep.subr.mxu0 %v94_v41  ;;  %v335_v41 = vld [vmem:[%s1319_s4 + $0x78] sm:$0xff] }
  0x2b   :  { %156 = vmatpush2.msra.mxu0 %v93_v42  ;;  %v334_v42 = vld [vmem:[%s1319_s4 + $0x70] sm:$0xff] }
  0x2c   :  { %157 = vmatprep.subr.mxu0 %v92_v43  ;;  %v331_v43 = vld [vmem:[%s1319_s4 + $0x58] sm:$0xff] }
  0x2d   :  { %158 = vmatpush2.msra.mxu0 %v91_v44  ;;  %v330_v44 = vld [vmem:[%s1319_s4 + $0x50] sm:$0xff] }
  0x2e   :  { %159 = vmatprep.subr.mxu0 %v90_v45  ;;  %v327_v45 = vld [vmem:[%s1319_s4 + $0x38] sm:$0xff] }
  0x2f   :  { %160 = vmatpush2.msra.mxu0 %v89_v46  ;;  %v326_v46 = vld [vmem:[%s1319_s4 + $0x30] sm:$0xff] }
  0x30   :  { %161 = vmatprep.subr.mxu0 %v88_v47  ;;  %v323_v47 = vld [vmem:[%s1319_s4 + $0x18] sm:$0xff] }
  0x31   :  { %162 = vmatpush2.msra.mxu0 %v87_v48  ;;  %v322_v48 = vld [vmem:[%s1319_s4 + $0x10] sm:$0xff] }
  0x32   :  { %163 = vmatprep.subr.mxu0 %v86_v49  ;;  %v447_v49 = vld [vmem:[%s1319_s4 + $0x3f8] sm:$0xff] }
  0x33   :  { %164 = vmatpush2.msra.mxu0 %v85_v50  ;;  %v446_v50 = vld [vmem:[%s1319_s4 + $0x3f0] sm:$0xff] }
  0x34   :  { %165 = vmatprep.subr.mxu0 %v84_v51  ;;  %v443_v51 = vld [vmem:[%s1319_s4 + $0x3d8] sm:$0xff] }
  0x35   :  { %166 = vmatpush2.msra.mxu0 %v83_v52  ;;  %v442_v52 = vld [vmem:[%s1319_s4 + $0x3d0] sm:$0xff] }
  0x36   :  { %167 = vmatprep.subr.mxu0 %v82_v53  ;;  %v439_v53 = vld [vmem:[%s1319_s4 + $0x3b8] sm:$0xff] }
  0x37   :  { %168 = vmatpush2.msra.mxu0 %v81_v54  ;;  %v438_v54 = vld [vmem:[%s1319_s4 + $0x3b0] sm:$0xff] }
  0x38   :  { %169 = vmatprep.subr.mxu0 %v80_v55  ;;  %v435_v55 = vld [vmem:[%s1319_s4 + $0x398] sm:$0xff] }
  0x39   :  { %170 = vmatpush2.msra.mxu0 %v79_v56  ;;  %v434_v56 = vld [vmem:[%s1319_s4 + $0x390] sm:$0xff] }
  0x3a   :  { %171 = vmatprep.subr.mxu0 %v78_v57  ;;  %v431_v57 = vld [vmem:[%s1319_s4 + $0x378] sm:$0xff] }
  0x3b   :  { %172 = vmatpush2.msra.mxu0 %v77_v58  ;;  %v430_v58 = vld [vmem:[%s1319_s4 + $0x370] sm:$0xff] }
  0x3c   :  { %173 = vmatprep.subr.mxu0 %v76_v59  ;;  %v427_v59 = vld [vmem:[%s1319_s4 + $0x358] sm:$0xff] }
  0x3d   :  { %174 = vmatpush2.msra.mxu0 %v75_v60  ;;  %v426_v60 = vld [vmem:[%s1319_s4 + $0x350] sm:$0xff] }
  0x3e   :  { %175 = vmatprep.subr.mxu0 %v74_v61  ;;  %v423_v61 = vld [vmem:[%s1319_s4 + $0x338] sm:$0xff] }
  0x3f   :  { %176 = vmatpush2.msra.mxu0 %v73_v62  ;;  %v422_v62 = vld [vmem:[%s1319_s4 + $0x330] sm:$0xff] }
  0x40   :  { %177 = vmatprep.subr.mxu0 %v72_v63  ;;  %v419_v63 = vld [vmem:[%s1319_s4 + $0x318] sm:$0xff] }
  0x41   :  { %178 = vmatpush2.msra.mxu0 %v71_v0  ;;  %v418_v0 = vld [vmem:[%s1319_s4 + $0x310] sm:$0xff] }
  0x42   :  { %180 = vmatmul.mubr.f32.vlgmr.msra.gmra.mxu0 %v23_v1  ;;  %541 = vmatprep.subr.mxu0 %v383_v17  ;;  %v415_v1 = vld [vmem:[%s1319_s4 + $0x2f8] sm:$0xff] }
  0x43   :  { %185 = vmatprep.mubr.f32.mxu0 %v26_v2  ;;  %542 = vmatpush1.msra.mxu0 %v382_v18  ;;  %v414_v2 = vld [vmem:[%s1319_s4 + $0x2f0] sm:$0xff] }
  0x44   :  { %543 = vmatprep.subr.mxu0 %v379_v19 }
  0x45   :  { %544 = vmatpush1.msra.mxu0 %v378_v20 }
  0x46   :  { %186 = vmatmul.mubr.f32.gmra.mxu0 %v25_v3  ;;  %545 = vmatprep.subr.mxu0 %v375_v21  ;;  %v411_v3 = vld [vmem:[%s1319_s4 + $0x2d8] sm:$0xff]  ;;  %v105_v21 = vlaneseq }
  0x47   :  { %191 = vmatprep.mubr.f32.mxu0 %v28_v4  ;;  %546 = vmatpush1.msra.mxu0 %v374_v22  ;;  %v410_v4 = vld [vmem:[%s1319_s4 + $0x2d0] sm:$0xff] }
  0x48   :  { %547 = vmatprep.subr.mxu0 %v371_v23 }
  0x49   :  { %548 = vmatpush1.msra.mxu0 %v370_v24  ;;  %v1084_v24 = vshrl.u32 %v105_v21, 7  ;;  %v349_v21 = vld [vmem:[%s1319_s4 + $0xe8] sm:$0xff] }
  0x4a   :  { %192 = vmatmul.mubr.f32.gmra.mxu0 %v27_v5  ;;  %549 = vmatprep.subr.mxu0 %v367_v25  ;;  %v407_v5 = vld [vmem:[%s1319_s4 + $0x2b8] sm:$0xff] }
  0x4b   :  { %197 = vmatprep.mubr.f32.mxu0 %v30_v6  ;;  %550 = vmatpush1.msra.mxu0 %v366_v26  ;;  %v406_v6 = vld [vmem:[%s1319_s4 + $0x2b0] sm:$0xff] }
  0x4c   :  { %551 = vmatprep.subr.mxu0 %v363_v27  ;;  %v107_v27 = vsub.s32 0, %v1084_v24 }
  0x4d   :  { %552 = vmatpush1.msra.mxu0 %v362_v28 }
  0x4e   :  { %198 = vmatmul.mubr.f32.gmra.mxu0 %v29_v7  ;;  %553 = vmatprep.subr.mxu0 %v359_v29  ;;  %v403_v7 = vld [vmem:[%s1319_s4 + $0x298] sm:$0xff]  ;;  %v103_v29 = vld [vmem:[%s1320_s2] sm:$0x3] }
  0x4f   :  { %203 = vmatprep.mubr.f32.mxu0 %v32_v8  ;;  %554 = vmatpush1.msra.mxu0 %v358_v30  ;;  %v402_v8 = vld [vmem:[%s1319_s4 + $0x290] sm:$0xff]  ;;  %v111_v30 = vsub.s32 1, %v1084_v24 }
  0x50   :  { %555 = vmatprep.subr.mxu0 %v355_v31 }
  0x51   :  { %556 = vmatpush1.msra.mxu0 %v354_v32  ;;  %v108_v32 = vrot.slane %v103_v29, %v107_v27 }
  0x52   :  { %204 = vmatmul.mubr.f32.gmra.mxu0 %v31_v9  ;;  %557 = vmatprep.subr.mxu0 %v351_v33  ;;  %v399_v9 = vld [vmem:[%s1319_s4 + $0x278] sm:$0xff] }
  0x53   :  { %209 = vmatprep.mubr.f32.mxu0 %v34_v10  ;;  %558 = vmatpush1.msra.mxu0 %v350_v34  ;;  %v398_v10 = vld [vmem:[%s1319_s4 + $0x270] sm:$0xff]  ;;  %v112_v34 = vrot.slane %v103_v29, %v111_v30  ;;  %v337_v29 = vld [vmem:[%s1319_s4 + $0x88] sm:$0xff] }
  0x54   :  { %559 = vmatprep.subr.mxu0 %v347_v35 }
  0x55   :  { %560 = vmatpush1.msra.mxu0 %v346_v36 }
  0x56   :  { %210 = vmatmul.mubr.f32.gmra.mxu0 %v33_v11  ;;  %561 = vmatprep.subr.mxu0 %v343_v37  ;;  %v395_v11 = vld [vmem:[%s1319_s4 + $0x258] sm:$0xff] }
  0x57   :  { %215 = vmatprep.mubr.f32.mxu0 %v36_v12  ;;  %562 = vmatpush1.msra.mxu0 %v342_v38  ;;  %v394_v12 = vld [vmem:[%s1319_s4 + $0x250] sm:$0xff] }
  0x58   :  { %563 = vmatprep.subr.mxu0 %v339_v39 }
  0x59   :  { %564 = vmatpush1.msra.mxu0 %v338_v40 }
  0x5a   :  { %216 = vmatmul.mubr.f32.gmra.mxu0 %v35_v13  ;;  %565 = vmatprep.subr.mxu0 %v335_v41 }
  0x5b   :  { %221 = vmatprep.mubr.f32.mxu0 %v38_v14  ;;  %566 = vmatpush1.msra.mxu0 %v334_v42 }
  0x5c   :  { %567 = vmatprep.subr.mxu0 %v331_v43 }
  0x5d   :  { %568 = vmatpush1.msra.mxu0 %v330_v44 }
  0x5e   :  { %222 = vmatmul.mubr.f32.gmra.mxu0 %v37_v15  ;;  %569 = vmatprep.subr.mxu0 %v327_v45 }
  0x5f   :  { %570 = vmatpush1.msra.mxu0 %v326_v46 }
  0x60   :  { %571 = vmatprep.subr.mxu0 %v323_v47 }
  0x61   :  { %572 = vmatpush1.msra.mxu0 %v322_v48 }
  0x62   :  { %573 = vmatprep.subr.mxu0 %v447_v49 }
  0x63   :  { %574 = vmatpush2.msra.mxu0 %v446_v50 }
  0x64   :  { %575 = vmatprep.subr.mxu0 %v443_v51 }
  0x65   :  { %576 = vmatpush2.msra.mxu0 %v442_v52 }
  0x66   :  { %577 = vmatprep.subr.mxu0 %v439_v53 }
  0x67   :  { %578 = vmatpush2.msra.mxu0 %v438_v54 }
  0x68   :  { %579 = vmatprep.subr.mxu0 %v435_v55 }
  0x69   :  { %580 = vmatpush2.msra.mxu0 %v434_v56 }
  0x6a   :  { %581 = vmatprep.subr.mxu0 %v431_v57 }
  0x6b   :  { %582 = vmatpush2.msra.mxu0 %v430_v58 }
  0x6c   :  { %583 = vmatprep.subr.mxu0 %v427_v59 }
  0x6d   :  { %584 = vmatpush2.msra.mxu0 %v426_v60 }
  0x6e   :  { %585 = vmatprep.subr.mxu0 %v423_v61 }
  0x6f   :  { %586 = vmatpush2.msra.mxu0 %v422_v62 }
  0x70   :  { %587 = vmatprep.subr.mxu0 %v419_v63 }
  0x71   :  { %588 = vmatpush2.msra.mxu0 %v418_v0 }
  0x72   :  { %589 = vmatprep.subr.mxu0 %v415_v1 }
  0x73   :  { %590 = vmatpush2.msra.mxu0 %v414_v2 }
  0x74   :  { %591 = vmatprep.subr.mxu0 %v411_v3 }
  0x75   :  { %592 = vmatpush2.msra.mxu0 %v410_v4  ;;  %v244_v4 = vld [vmem:[%s1321_s3] sm:$0xf] }
  0x76   :  { %593 = vmatprep.subr.mxu0 %v407_v5  ;;  %v381_v5 = vld [vmem:[%s1319_s4 + $0x1e8] sm:$0xff] }
  0x77   :  { %594 = vmatpush2.msra.mxu0 %v406_v6  ;;  %v380_v6 = vld [vmem:[%s1319_s4 + $0x1e0] sm:$0xff] }
  0x78   :  { %595 = vmatprep.subr.mxu0 %v403_v7  ;;  %v377_v7 = vld [vmem:[%s1319_s4 + $0x1c8] sm:$0xff] }
  0x79   :  { %596 = vmatpush2.msra.mxu0 %v402_v8  ;;  %v376_v8 = vld [vmem:[%s1319_s4 + $0x1c0] sm:$0xff] }
  0x7a   :  { %597 = vmatprep.subr.mxu0 %v399_v9  ;;  %v373_v9 = vld [vmem:[%s1319_s4 + $0x1a8] sm:$0xff] }
  0x7b   :  { %598 = vmatpush2.msra.mxu0 %v398_v10  ;;  %v372_v10 = vld [vmem:[%s1319_s4 + $0x1a0] sm:$0xff] }
  0x7c   :  { %599 = vmatprep.subr.mxu0 %v395_v11  ;;  %v369_v11 = vld [vmem:[%s1319_s4 + $0x188] sm:$0xff] }
  0x7d   :  { %600 = vmatpush2.msra.mxu0 %v394_v12  ;;  %v368_v12 = vld [vmem:[%s1319_s4 + $0x180] sm:$0xff] }
 0x102   :  { %v181_v13 = vpop.f32.mrf.mxu0 }
 0x103   :  { %v182_v62 = vadd.f32 %v181_v13, %v108_v32  ;;  %v365_v13 = vld [vmem:[%s1319_s4 + $0x168] sm:$0xff] }
 0x104   :  { %v183_v14 = vpop.f32.mrf.mxu0 }
 0x105   :  { %v184_v60 = vadd.f32 %v183_v14, %v112_v34  ;;  %v228_v3 = vmax.f32 %v182_v62, 0.0  ;;  %v364_v14 = vld [vmem:[%s1319_s4 + $0x160] sm:$0xff]  ;;  %v401_v62 = vld [vmem:[%s1319_s4 + $0x288] sm:$0xff] }
 0x106   :  { %v187_v15 = vpop.f32.mrf.mxu0 }
 0x107   :  { %v188_v58 = vadd.f32 %v187_v15, %v108_v32  ;;  %v229_v2 = vmax.f32 %v184_v60, 0.0  ;;  %v361_v15 = vld [vmem:[%s1319_s4 + $0x148] sm:$0xff] }
 0x108   :  { %v189_v16 = vpop.f32.mrf.mxu0  ;;  %v405_v60 = vld [vmem:[%s1319_s4 + $0x2a8] sm:$0xff] }
 0x109   :  { %v190_v56 = vadd.f32 %v189_v16, %v112_v34  ;;  %v230_v1 = vmax.f32 %v188_v58, 0.0  ;;  %v360_v16 = vld [vmem:[%s1319_s4 + $0x140] sm:$0xff]  ;;  %v409_v58 = vld [vmem:[%s1319_s4 + $0x2c8] sm:$0xff] }
 0x10a   :  { %v193_v17 = vpop.f32.mrf.mxu0 }
 0x10b   :  { %v194_v54 = vadd.f32 %v193_v17, %v108_v32  ;;  %v231_v0 = vmax.f32 %v190_v56, 0.0  ;;  %v357_v17 = vld [vmem:[%s1319_s4 + $0x128] sm:$0xff] }
 0x10c   :  { %v195_v18 = vpop.f32.mrf.mxu0  ;;  %v413_v56 = vld [vmem:[%s1319_s4 + $0x2e8] sm:$0xff] }
 0x10d   :  { %v196_v52 = vadd.f32 %v195_v18, %v112_v34  ;;  %v232_v63 = vmax.f32 %v194_v54, 0.0  ;;  %v356_v18 = vld [vmem:[%s1319_s4 + $0x120] sm:$0xff]  ;;  %v417_v54 = vld [vmem:[%s1319_s4 + $0x308] sm:$0xff] }
 0x10e   :  { %v199_v19 = vpop.f32.mrf.mxu0 }
 0x10f   :  { %v200_v50 = vadd.f32 %v199_v19, %v108_v32  ;;  %v233_v61 = vmax.f32 %v196_v52, 0.0  ;;  %v353_v19 = vld [vmem:[%s1319_s4 + $0x108] sm:$0xff] }
 0x110   :  { %v201_v20 = vpop.f32.mrf.mxu0  ;;  %v421_v52 = vld [vmem:[%s1319_s4 + $0x328] sm:$0xff] }
 0x111   :  { %v202_v48 = vadd.f32 %v201_v20, %v112_v34  ;;  %v234_v59 = vmax.f32 %v200_v50, 0.0  ;;  %v352_v20 = vld [vmem:[%s1319_s4 + $0x100] sm:$0xff]  ;;  %v425_v50 = vld [vmem:[%s1319_s4 + $0x348] sm:$0xff] }
 0x112   :  { %v205_v22 = vpop.f32.mrf.mxu0 }
 0x113   :  { %v206_v46 = vadd.f32 %v205_v22, %v108_v32  ;;  %v235_v57 = vmax.f32 %v202_v48, 0.0  ;;  %v348_v22 = vld [vmem:[%s1319_s4 + $0xe0] sm:$0xff]  ;;  %v429_v48 = vld [vmem:[%s1319_s4 + $0x368] sm:$0xff] }
 0x114   :  { %v207_v23 = vpop.f32.mrf.mxu0 }
 0x115   :  { %v208_v44 = vadd.f32 %v207_v23, %v112_v34  ;;  %v236_v55 = vmax.f32 %v206_v46, 0.0  ;;  %v345_v23 = vld [vmem:[%s1319_s4 + $0xc8] sm:$0xff] }
 0x116   :  { %v211_v25 = vpop.f32.mrf.mxu0  ;;  %v433_v46 = vld [vmem:[%s1319_s4 + $0x388] sm:$0xff] }
 0x117   :  { %v212_v42 = vadd.f32 %v211_v25, %v108_v32  ;;  %v237_v53 = vmax.f32 %v208_v44, 0.0  ;;  %v344_v25 = vld [vmem:[%s1319_s4 + $0xc0] sm:$0xff]  ;;  %v437_v44 = vld [vmem:[%s1319_s4 + $0x3a8] sm:$0xff] }
 0x118   :  { %v213_v26 = vpop.f32.mrf.mxu0 }
 0x119   :  { %v214_v40 = vadd.f32 %v213_v26, %v112_v34  ;;  %v238_v51 = vmax.f32 %v212_v42, 0.0  ;;  %v341_v26 = vld [vmem:[%s1319_s4 + $0xa8] sm:$0xff] }
 0x11a   :  { %v217_v28 = vpop.f32.mrf.mxu0  ;;  %v441_v42 = vld [vmem:[%s1319_s4 + $0x3c8] sm:$0xff] }
 0x11b   :  { %v218_v39 = vadd.f32 %v217_v28, %v108_v32  ;;  %v239_v49 = vmax.f32 %v214_v40, 0.0  ;;  %v340_v28 = vld [vmem:[%s1319_s4 + $0xa0] sm:$0xff]  ;;  %v445_v40 = vld [vmem:[%s1319_s4 + $0x3e8] sm:$0xff] }
 0x11c   :  { %v219_v31 = vpop.f32.mrf.mxu0 }
 0x11d   :  { %v220_v37 = vadd.f32 %v219_v31, %v112_v34  ;;  %v240_v47 = vmax.f32 %v218_v39, 0.0  ;;  %v336_v31 = vld [vmem:[%s1319_s4 + $0x80] sm:$0xff] }
 0x11e   :  { %v223_v33 = vpop.f32.mrf.mxu0  ;;  %v320_v39 = vld [vmem:[%s1319_s4] sm:$0xff] }
 0x11f   :  { %v224_v35 = vadd.f32 %v223_v33, %v108_v32  ;;  %v241_v45 = vmax.f32 %v220_v37, 0.0  ;;  %v333_v32 = vld [vmem:[%s1319_s4 + $0x68] sm:$0xff]  ;;  %v332_v33 = vld [vmem:[%s1319_s4 + $0x60] sm:$0xff] }
 0x120   :  { %v225_v36 = vpop.f32.mrf.mxu0  ;;  %v324_v37 = vld [vmem:[%s1319_s4 + $0x20] sm:$0xff] }
 0x121   :  { %v226_v38 = vadd.f32 %v225_v36, %v112_v34  ;;  %v242_v43 = vmax.f32 %v224_v35, 0.0  ;;  %v329_v34 = vld [vmem:[%s1319_s4 + $0x48] sm:$0xff]  ;;  %v328_v35 = vld [vmem:[%s1319_s4 + $0x40] sm:$0xff] }
 0x122   :  { %v325_v36 = vld [vmem:[%s1319_s4 + $0x28] sm:$0xff] }
 0x123   :  { %v243_v41 = vmax.f32 %v226_v38, 0.0  ;;  %v321_v38 = vld [vmem:[%s1319_s4 + $0x8] sm:$0xff] }
 0x125   :  { %265 = vmatprep.subr.mxu1 %v243_v41  ;;  %v444_v41 = vld [vmem:[%s1319_s4 + $0x3e0] sm:$0xff] }
 0x126   :  { %266 = vmatpush1.msra.mxu1 %v242_v43  ;;  %v440_v43 = vld [vmem:[%s1319_s4 + $0x3c0] sm:$0xff] }
 0x127   :  { %267 = vmatprep.subr.mxu1 %v241_v45  ;;  %v436_v45 = vld [vmem:[%s1319_s4 + $0x3a0] sm:$0xff] }
 0x128   :  { %268 = vmatpush1.msra.mxu1 %v240_v47  ;;  %v432_v47 = vld [vmem:[%s1319_s4 + $0x380] sm:$0xff] }
 0x129   :  { %269 = vmatprep.subr.mxu1 %v239_v49  ;;  %v428_v49 = vld [vmem:[%s1319_s4 + $0x360] sm:$0xff] }
 0x12a   :  { %270 = vmatpush1.msra.mxu1 %v238_v51  ;;  %v424_v51 = vld [vmem:[%s1319_s4 + $0x340] sm:$0xff] }
 0x12b   :  { %271 = vmatprep.subr.mxu1 %v237_v53  ;;  %v420_v53 = vld [vmem:[%s1319_s4 + $0x320] sm:$0xff] }
 0x12c   :  { %272 = vmatpush1.msra.mxu1 %v236_v55  ;;  %v416_v55 = vld [vmem:[%s1319_s4 + $0x300] sm:$0xff] }
 0x12d   :  { %273 = vmatprep.subr.mxu1 %v235_v57  ;;  %v412_v57 = vld [vmem:[%s1319_s4 + $0x2e0] sm:$0xff] }
 0x12e   :  { %274 = vmatpush1.msra.mxu1 %v234_v59  ;;  %v408_v59 = vld [vmem:[%s1319_s4 + $0x2c0] sm:$0xff] }
 0x12f   :  { %275 = vmatprep.subr.mxu1 %v233_v61  ;;  %v404_v61 = vld [vmem:[%s1319_s4 + $0x2a0] sm:$0xff] }
 0x130   :  { %276 = vmatpush1.msra.mxu1 %v232_v63  ;;  %v400_v63 = vld [vmem:[%s1319_s4 + $0x280] sm:$0xff] }
 0x131   :  { %277 = vmatprep.subr.mxu1 %v231_v0  ;;  %v397_v0 = vld [vmem:[%s1319_s4 + $0x268] sm:$0xff] }
 0x132   :  { %278 = vmatpush1.msra.mxu1 %v230_v1  ;;  %v396_v1 = vld [vmem:[%s1319_s4 + $0x260] sm:$0xff] }
 0x133   :  { %279 = vmatprep.subr.mxu1 %v229_v2  ;;  %v393_v2 = vld [vmem:[%s1319_s4 + $0x248] sm:$0xff] }
 0x134   :  { %280 = vmatpush1.msra.mxu1 %v228_v3  ;;  %v392_v3 = vld [vmem:[%s1319_s4 + $0x240] sm:$0xff] }
 0x135   :  { %626 = vmatmul.mubr.msk.f32.vlgmr.msra.gmra.mxu1 %vm245_vm0, %v244_v4  ;;  %470 = vmatprep.subr.mxu1 %v381_v5  ;;  %v389_v4 = vld [vmem:[%s1319_s4 + $0x228] sm:$0xff]  ;;  %v391_v5 = vld [vmem:[%s1319_s4 + $0x238] sm:$0xff] }
 0x136   :  { %471 = vmatpush1.msra.mxu1 %v380_v6  ;;  %601 = vmatprep.subr.mxu0 %v391_v5  ;;  %v388_v6 = vld [vmem:[%s1319_s4 + $0x220] sm:$0xff] }
 0x137   :  { %472 = vmatprep.subr.mxu1 %v377_v7  ;;  %v390_v7 = vld [vmem:[%s1319_s4 + $0x230] sm:$0xff] }
 0x138   :  { %473 = vmatpush1.msra.mxu1 %v376_v8  ;;  %602 = vmatpush2.msra.mxu0 %v390_v7  ;;  %v385_v8 = vld [vmem:[%s1319_s4 + $0x208] sm:$0xff] }
 0x139   :  { %474 = vmatprep.subr.mxu1 %v373_v9  ;;  %v387_v9 = vld [vmem:[%s1319_s4 + $0x218] sm:$0xff] }
 0x13a   :  { %475 = vmatpush1.msra.mxu1 %v372_v10  ;;  %603 = vmatprep.subr.mxu0 %v387_v9  ;;  %v384_v10 = vld [vmem:[%s1319_s4 + $0x200] sm:$0xff] }
 0x13b   :  { %476 = vmatprep.subr.mxu1 %v369_v11  ;;  %v386_v11 = vld [vmem:[%s1319_s4 + $0x210] sm:$0xff] }
 0x13c   :  { %477 = vmatpush1.msra.mxu1 %v368_v12  ;;  %604 = vmatpush2.msra.mxu0 %v386_v11 }
 0x13d   :  { %478 = vmatprep.subr.mxu1 %v365_v13 }
 0x13e   :  { %479 = vmatpush1.msra.mxu1 %v364_v14  ;;  %v460_v14 = vsub.s32 2, %v1084_v24 }
 0x13f   :  { %480 = vmatprep.subr.mxu1 %v361_v15  ;;  %v464_v15 = vsub.s32 3, %v1084_v24 }
 0x140   :  { %481 = vmatpush1.msra.mxu1 %v360_v16  ;;  %v448_v16 = vld [vmem:[%s1322_s5] sm:$0xf] }
 0x141   :  { %482 = vmatprep.subr.mxu1 %v357_v17  ;;  %v453_v17 = vrot.slane %v448_v16, %v107_v27 }
 0x142   :  { %483 = vmatpush1.msra.mxu1 %v356_v18  ;;  %v461_v18 = vrot.slane %v448_v16, %v460_v14 }
 0x143   :  { %484 = vmatprep.subr.mxu1 %v353_v19  ;;  %v457_v19 = vrot.slane %v448_v16, %v111_v30 }
 0x144   :  { %485 = vmatpush1.msra.mxu1 %v352_v20  ;;  %v465_v20 = vrot.slane %v448_v16, %v464_v15 }
 0x145   :  { %486 = vmatprep.subr.mxu1 %v349_v21 }
 0x146   :  { %487 = vmatpush1.msra.mxu1 %v348_v22 }
 0x147   :  { %488 = vmatprep.subr.mxu1 %v345_v23 }
 0x148   :  { %489 = vmatpush1.msra.mxu1 %v344_v25 }
 0x149   :  { %490 = vmatprep.subr.mxu1 %v341_v26 }
 0x14a   :  { %491 = vmatpush1.msra.mxu1 %v340_v28 }
 0x14b   :  { %492 = vmatprep.subr.mxu1 %v337_v29 }
 0x14c   :  { %493 = vmatpush1.msra.mxu1 %v336_v31 }
 0x14d   :  { %494 = vmatprep.subr.mxu1 %v333_v32 }
 0x14e   :  { %495 = vmatpush1.msra.mxu1 %v332_v33 }
 0x14f   :  { %496 = vmatprep.subr.mxu1 %v329_v34 }
 0x150   :  { %497 = vmatpush1.msra.mxu1 %v328_v35 }
 0x151   :  { %498 = vmatprep.subr.mxu1 %v325_v36 }
 0x152   :  { %499 = vmatpush1.msra.mxu1 %v324_v37 }
 0x153   :  { %500 = vmatprep.subr.mxu1 %v321_v38 }
 0x154   :  { %501 = vmatpush1.msra.mxu1 %v320_v39 }
 0x155   :  { %502 = vmatprep.subr.mxu1 %v445_v40 }
 0x156   :  { %503 = vmatpush2.msra.mxu1 %v444_v41 }
 0x157   :  { %504 = vmatprep.subr.mxu1 %v441_v42 }
 0x158   :  { %505 = vmatpush2.msra.mxu1 %v440_v43 }
 0x159   :  { %506 = vmatprep.subr.mxu1 %v437_v44 }
 0x15a   :  { %507 = vmatpush2.msra.mxu1 %v436_v45 }
 0x15b   :  { %508 = vmatprep.subr.mxu1 %v433_v46 }
 0x15c   :  { %509 = vmatpush2.msra.mxu1 %v432_v47 }
 0x15d   :  { %510 = vmatprep.subr.mxu1 %v429_v48 }
 0x15e   :  { %511 = vmatpush2.msra.mxu1 %v428_v49 }
 0x15f   :  { %512 = vmatprep.subr.mxu1 %v425_v50 }
 0x160   :  { %513 = vmatpush2.msra.mxu1 %v424_v51 }
 0x161   :  { %514 = vmatprep.subr.mxu1 %v421_v52 }
 0x162   :  { %515 = vmatpush2.msra.mxu1 %v420_v53 }
 0x163   :  { %516 = vmatprep.subr.mxu1 %v417_v54 }
 0x164   :  { %517 = vmatpush2.msra.mxu1 %v416_v55 }
 0x165   :  { %518 = vmatprep.subr.mxu1 %v413_v56 }
 0x166   :  { %519 = vmatpush2.msra.mxu1 %v412_v57 }
 0x167   :  { %520 = vmatprep.subr.mxu1 %v409_v58 }
 0x168   :  { %521 = vmatpush2.msra.mxu1 %v408_v59 }
 0x169   :  { %522 = vmatprep.subr.mxu1 %v405_v60 }
 0x16a   :  { %523 = vmatpush2.msra.mxu1 %v404_v61 }
 0x16b   :  { %524 = vmatprep.subr.mxu1 %v401_v62 }
 0x16c   :  { %525 = vmatpush2.msra.mxu1 %v400_v63 }
 0x16d   :  { %526 = vmatprep.subr.mxu1 %v397_v0 }
 0x16e   :  { %527 = vmatpush2.msra.mxu1 %v396_v1 }
 0x16f   :  { %528 = vmatprep.subr.mxu1 %v393_v2 }
 0x170   :  { %529 = vmatpush2.msra.mxu1 %v392_v3 }
 0x171   :  { %530 = vmatprep.subr.mxu1 %v389_v4 }
 0x172   :  { %531 = vmatpush2.msra.mxu1 %v388_v6 }
 0x173   :  { %532 = vmatprep.subr.mxu1 %v385_v8 }
 0x174   :  { %533 = vmatpush2.msra.mxu1 %v384_v10 }
 0x1f5   :  { %v315_v12 = vpop.f32.mrf.mxu1 }
 0x1f7   :  { %v317_v13 = vpop.f32.mrf.mxu1 }
 0x1f8   :  { %534 = vmatprep.mubr.f32.mxu1 %v317_v13  ;;  %605 = vmatprep.mubr.f32.mxu0 %v317_v13 }
 0x1f9   :  { %535 = vmatmul.mubr.f32.vlgmr.msra.gmra.mxu1 %v315_v12  ;;  %606 = vmatmul.mubr.f32.vlgmr.msra.gmra.mxu0 %v315_v12 }
 0x2b9   :  { %v536_v21 = vpop.f32.mrf.mxu1  ;;  %v607_v22 = vpop.f32.mrf.mxu0 }
 0x2ba   :  { %v537_v26 = vadd.f32 %v536_v21, %v453_v17  ;;  %v608_v28 = vadd.f32 %v607_v22, %v461_v18 }
 0x2bb   :  { %v538_v23 = vpop.f32.mrf.mxu1  ;;  %v609_v25 = vpop.f32.mrf.mxu0 }
 0x2bc   :  { %v539_v29 = vadd.f32 %v538_v23, %v457_v19  ;;  %v610_v31 = vadd.f32 %v609_v25, %v465_v20 }
 0x2be   :  { %v616_v32 = vcombine.low %v537_v26, %v539_v29  ;;  %v617_v33 = vcombine.low %v608_v28, %v610_v31 }
 0x2c0   :  { %620 = vst [vmem:[%s1323_s6] sm:$0xff] %v616_v32  ;;  %621 = vst [vmem:[%s1323_s6 + $0x8] sm:$0xff] %v617_v33 }

</bundles_post_ra>
